<compile_context>
chip_gen: v7x
topology: tpu7x:2x2x1
jax: 0.10.0
libtpu: 0.0.40
codegen_flags: <defaults>
</compile_context>

<pallas_src>
import numpy as np
import jax
import jax.numpy as jnp
from jax.experimental import pallas as pl
from jax.experimental.pallas import tpu as pltpu

_LANE = 128
_SUBLANE = 8
_NEG_INF = -1e30
_EPS = 1e-8


def _round_up(x, m):
    return ((x + m - 1) // m) * m


def _make_cost_kernel(w_bbox: float, w_giou: float):
    def kernel(logits_ref, onehot_t_ref, pbox_ref, tbox_t_ref, cost_ref):
        # ---- softmax over classes (padded classes hold -1e30 -> contribute 0)
        logits = logits_ref[...]                                  # (TN, C_pad) f32
        m = jnp.max(logits, axis=-1, keepdims=True)
        e = jnp.exp(logits - m)
        denom = jnp.sum(e, axis=-1, keepdims=True)
        prob = e * pl.reciprocal(denom, approx=True)              # EUP, off the VALU slot

        # ---- class cost: (-w_class) already folded into onehot_t; bf16 MXU matmul
        class_term = jnp.dot(prob.astype(jnp.bfloat16), onehot_t_ref[...],
                             preferred_element_type=jnp.float32)  # (TN, M_pad)

        pb = pbox_ref[...]       # (TN, 4)   cxcywh predictions
        tbt = tbox_t_ref[...]    # (4, M_pad) cxcywh targets (transposed)

        pcx, pcy, pw, ph = pb[:, 0:1], pb[:, 1:2], pb[:, 2:3], pb[:, 3:4]      # (TN,1)
        tcx, tcy, tw, th = tbt[0:1, :], tbt[1:2, :], tbt[2:3, :], tbt[3:4, :]  # (1,M_pad)

        # ---- cost_bbox: L1 cdist (torch.cdist p=1)
        cost_bbox = (jnp.abs(pcx - tcx) + jnp.abs(pcy - tcy)
                     + jnp.abs(pw - tw) + jnp.abs(ph - th))        # (TN, M_pad)

        # ---- cxcywh -> xyxy
        px0, px1 = pcx - 0.5 * pw, pcx + 0.5 * pw
        py0, py1 = pcy - 0.5 * ph, pcy + 0.5 * ph
        tx0, tx1 = tcx - 0.5 * tw, tcx + 0.5 * tw
        ty0, ty1 = tcy - 0.5 * th, tcy + 0.5 * th

        area_p = (px1 - px0) * (py1 - py0)                         # (TN, 1)
        area_t = (tx1 - tx0) * (ty1 - ty0)                         # (1, M_pad)

        # ---- IoU (approx reciprocal on the EUP slot, eps for degenerate boxes)
        iw = jnp.maximum(jnp.minimum(px1, tx1) - jnp.maximum(px0, tx0), 0.0)
        ih = jnp.maximum(jnp.minimum(py1, ty1) - jnp.maximum(py0, ty0), 0.0)
        inter = iw * ih                                            # (TN, M_pad)
        union = area_p + area_t - inter
        iou = inter * pl.reciprocal(union + _EPS, approx=True)

        # ---- generalized IoU penalty term
        ew = jnp.maximum(jnp.maximum(px1, tx1) - jnp.minimum(px0, tx0), 0.0)
        eh = jnp.maximum(jnp.maximum(py1, ty1) - jnp.minimum(py0, ty0), 0.0)
        earea = ew * eh
        penalty = (earea - union) * pl.reciprocal(earea + _EPS, approx=True)

        # cost = w_bbox*L1 + (-w_class*prob_gather) + w_giou*(-(iou - penalty))
        cost_ref[...] = (w_bbox * cost_bbox + class_term
                         + w_giou * (penalty - iou))
    return kernel


def compute_cost_matrix(pred_logits, pred_boxes, tgt_ids, tgt_boxes,
                        cost_class=1.0, cost_bbox=1.0, cost_giou=1.0,
                        tile_n=256):
    """Returns the (bs, num_queries, M) DETR matching cost matrix via Pallas."""
    bs, nq, nc = pred_logits.shape
    N = bs * nq
    M = int(tgt_ids.shape[0])

    nc_pad = _round_up(nc, _LANE)
    m_pad = _round_up(max(M, 1), _LANE)
    # TILE_N=256 is safe on v7x (64 MiB VMEM); v6e/v5e could use 512-1024.
    tile_n = min(tile_n, _round_up(N, _SUBLANE))
    n_pad = _round_up(N, tile_n)

    # logits padded with a large negative value so the softmax is unchanged.
    logits = pred_logits.reshape(N, nc).astype(jnp.float32)
    logits = jnp.pad(logits, ((0, n_pad - N), (0, nc_pad - nc)),
                     constant_values=_NEG_INF)

    pboxes = pred_boxes.reshape(N, 4).astype(jnp.float32)
    pboxes = jnp.pad(pboxes, ((0, n_pad - N), (0, 0)))

    # (-w_class) folded into the one-hot matrix; padded class rows / target
    # columns are zero so padded lanes contribute nothing.
    onehot_t = (-float(cost_class)) * jax.nn.one_hot(
        tgt_ids, nc_pad, dtype=jnp.float32).T                      # (nc_pad, M)
    onehot_t = jnp.pad(onehot_t, ((0, 0), (0, m_pad - M))).astype(jnp.bfloat16)

    tboxes_t = tgt_boxes.astype(jnp.float32).T                     # (4, M)
    tboxes_t = jnp.pad(tboxes_t, ((0, 0), (0, m_pad - M)))

    grid = (n_pad // tile_n,)

    flops = 2 * n_pad * nc_pad * m_pad + 40 * n_pad * m_pad
    bytes_accessed = (n_pad * nc_pad * 4 + nc_pad * m_pad * 2
                      + n_pad * 4 * 4 + 4 * m_pad * 4 + n_pad * m_pad * 4)

    cost = pl.pallas_call(
        _make_cost_kernel(float(cost_bbox), float(cost_giou)),
        out_shape=jax.ShapeDtypeStruct((n_pad, m_pad), jnp.float32),
        grid=grid,
        in_specs=[pl.BlockSpec((tile_n, nc_pad), lambda i: (i, 0)),
                  pl.BlockSpec((nc_pad, m_pad), lambda i: (0, 0)),
                  pl.BlockSpec((tile_n, 4), lambda i: (i, 0)),
                  pl.BlockSpec((4, m_pad), lambda i: (0, 0))],
        out_specs=pl.BlockSpec((tile_n, m_pad), lambda i: (i, 0)),
        compiler_params=pltpu.CompilerParams(
            dimension_semantics=("parallel",)),
        cost_estimate=pl.CostEstimate(flops=flops,
                                      transcendentals=n_pad * nc_pad,
                                      bytes_accessed=bytes_accessed),
    )(logits, onehot_t, pboxes, tboxes_t)

    # Slice off row/column padding before the host-side assignment.
    return cost[:N, :M].reshape(bs, nq, M)


# ---------------------------------------------------------------------------
# Host-side Hungarian assignment (sequential, data-dependent -> NumPy).
# TODO(synk): linear_sum_assignment has no clean Pallas equivalent; done on host.
# ---------------------------------------------------------------------------
def _linear_sum_assignment(cost):
    """Minimum-cost assignment (Hungarian with potentials, O(n^2 m)).

    Returns (row_ind, col_ind), row_ind sorted ascending, like
    scipy.optimize.linear_sum_assignment.
    """
    cost = np.asarray(cost, dtype=np.float64)
    transposed = cost.shape[0] > cost.shape[1]
    if transposed:
        cost = cost.T
    n, m = cost.shape                      # n <= m
    u = np.zeros(n + 1)
    v = np.zeros(m + 1)
    p = np.zeros(m + 1, dtype=np.int64)    # p[j] = row (1-indexed) matched to col j
    way = np.zeros(m + 1, dtype=np.int64)
    for i in range(1, n + 1):
        p[0] = i
        j0 = 0
        minv = np.full(m + 1, np.inf)
        used = np.zeros(m + 1, dtype=bool)
        while True:
            used[j0] = True
            i0 = p[j0]
            free = ~used[1:]
            cur = cost[i0 - 1, :] - u[i0] - v[1:]
            better = free & (cur < minv[1:])
            minv[1:][better] = cur[better]
            way[1:][better] = j0
            masked = np.where(free, minv[1:], np.inf)
            j1 = int(np.argmin(masked)) + 1
            delta = masked[j1 - 1]
            u[p[used]] += delta
            v[used] -= delta
            minv[1:][free] -= delta
            j0 = j1
            if p[j0] == 0:
                break
        while True:
            j1 = way[j0]
            p[j0] = p[j1]
            j0 = j1
            if j0 == 0:
                break
    cols = np.arange(m, dtype=np.int64)
    mask = p[1:] > 0
    rows = (p[1:] - 1)[mask]
    cols = cols[mask]
    if transposed:
        rows, cols = cols, rows
    order = np.argsort(rows)
    return rows[order].astype(np.int64), cols[order].astype(np.int64)


class HungarianMatcher:
    def __init__(self, cost_class: float = 1, cost_bbox: float = 1, cost_giou: float = 1):
        self.cost_class = cost_class
        self.cost_bbox = cost_bbox
        self.cost_giou = cost_giou
        assert cost_class != 0 or cost_bbox != 0 or cost_giou != 0, "all costs cant be 0"

    def __call__(self, outputs, targets, plane=None):
        bs, num_queries = outputs["pred_logits"].shape[:2]
        tgt_ids = jnp.concatenate([v["labels"] for v in targets])
        tgt_bbox = jnp.concatenate([v["boxes"] for v in targets])

        C = compute_cost_matrix(outputs["pred_logits"], outputs["pred_boxes"],
                                tgt_ids, tgt_bbox,
                                self.cost_class, self.cost_bbox, self.cost_giou)
        C_np = np.asarray(jax.block_until_ready(C))      # (bs, num_queries, M)

        sizes = [int(v["boxes"].shape[0]) for v in targets]
        indices = []
        off = 0
        for i, s in enumerate(sizes):
            sub = C_np[i, :, off:off + s]
            indices.append(_linear_sum_assignment(sub))
            off += s
        return [(np.asarray(i, dtype=np.int64), np.asarray(j, dtype=np.int64))
                for i, j in indices]


# ---------------------------------------------------------------------------
# Pure-JAX reference (f32, exact divides) used to validate the kernel output.
# ---------------------------------------------------------------------------
def _reference_cost(pred_logits, pred_boxes, tgt_ids, tgt_boxes, wc, wb, wg):
    bs, nq, nc = pred_logits.shape
    prob = jax.nn.softmax(pred_logits.reshape(-1, nc), axis=-1)
    cost_class = -prob[:, tgt_ids]
    pb = pred_boxes.reshape(-1, 4)
    tb = tgt_boxes
    cost_bbox = jnp.sum(jnp.abs(pb[:, None, :] - tb[None, :, :]), axis=-1)

    def to_xyxy(b):
        cx, cy, w, h = b[..., 0], b[..., 1], b[..., 2], b[..., 3]
        return jnp.stack([cx - 0.5 * w, cy - 0.5 * h, cx + 0.5 * w, cy + 0.5 * h], -1)

    pxy, txy = to_xyxy(pb), to_xyxy(tb)
    lt = jnp.maximum(pxy[:, None, :2], txy[None, :, :2])
    rb = jnp.minimum(pxy[:, None, 2:], txy[None, :, 2:])
    wh = jnp.clip(rb - lt, 0.0)
    inter = wh[..., 0] * wh[..., 1]
    area_p = (pxy[:, 2] - pxy[:, 0]) * (pxy[:, 3] - pxy[:, 1])
    area_t = (txy[:, 2] - txy[:, 0]) * (txy[:, 3] - txy[:, 1])
    union = area_p[:, None] + area_t[None, :] - inter
    iou = inter / union
    lt2 = jnp.minimum(pxy[:, None, :2], txy[None, :, :2])
    rb2 = jnp.maximum(pxy[:, None, 2:], txy[None, :, 2:])
    wh2 = jnp.clip(rb2 - lt2, 0.0)
    earea = wh2[..., 0] * wh2[..., 1]
    giou = iou - (earea - union) / earea
    C = wb * cost_bbox + wc * cost_class + wg * (-giou)
    return C.reshape(bs, nq, -1)


if __name__ == "__main__":
    key = jax.random.PRNGKey(0)
    bs, num_queries, num_classes = 2, 8, 32
    k1, k2, k3, k4 = jax.random.split(key, 4)

    pred_logits = jax.random.normal(k1, (bs, num_queries, num_classes), dtype=jnp.float32)
    # boxes in cxcywh, safely inside the unit square with positive w/h
    pred_boxes = jax.random.uniform(k2, (bs, num_queries, 4),
                                    minval=0.2, maxval=0.4, dtype=jnp.float32)

    sizes = [3, 5]
    targets = []
    k3s = jax.random.split(k3, len(sizes))
    k4s = jax.random.split(k4, len(sizes))
    for s, kl, kb in zip(sizes, k3s, k4s):
        labels = jax.random.randint(kl, (s,), 0, num_classes, dtype=jnp.int32)
        boxes = jax.random.uniform(kb, (s, 4), minval=0.2, maxval=0.4, dtype=jnp.float32)
        targets.append({"labels": labels, "boxes": boxes})

    tgt_ids = jnp.concatenate([v["labels"] for v in targets])
    tgt_bbox = jnp.concatenate([v["boxes"] for v in targets])

    # Kernel cost matrix vs pure-JAX reference (loose tol: bf16 matmul + approx recip)
    C_kernel = jax.block_until_ready(
        compute_cost_matrix(pred_logits, pred_boxes, tgt_ids, tgt_bbox, 1.0, 1.0, 1.0))
    C_ref = jax.block_until_ready(
        _reference_cost(pred_logits, pred_boxes, tgt_ids, tgt_bbox, 1.0, 1.0, 1.0))
    assert C_kernel.shape == (bs, num_queries, int(tgt_ids.shape[0]))
    assert np.allclose(np.asarray(C_kernel), np.asarray(C_ref), rtol=5e-2, atol=5e-2), \
        "kernel cost matrix deviates from reference"

    matcher = HungarianMatcher(cost_class=1, cost_bbox=1, cost_giou=1)
    indices = matcher({"pred_logits": pred_logits, "pred_boxes": pred_boxes}, targets)

    for (i, j), s in zip(indices, sizes):
        assert i.shape == (s,) and j.shape == (s,)
        assert i.dtype == np.int64 and j.dtype == np.int64
        assert len(np.unique(i)) == s and len(np.unique(j)) == s

    print("KERNEL_OK")
</pallas_src>

<mosaic_0001>
module attributes {stable_mosaic.version = 11 : i64} {
  func.func @kernel(%arg0: i32, %arg1: memref<16x128xf32, #tpu.memory_space<vmem>>, %arg2: memref<128x128xbf16, #tpu.memory_space<vmem>>, %arg3: memref<16x4xf32, #tpu.memory_space<vmem>>, %arg4: memref<4x128xf32, #tpu.memory_space<vmem>>, %arg5: memref<16x128xf32, #tpu.memory_space<vmem>>) attributes {dimension_semantics = [#tpu.dimension_semantics<parallel>], iteration_bounds = array<i64: 1>, scalar_prefetch = 0 : i64, scratch_operands = 0 : i64, tpu.core_type = #tpu.core_type<tc>, window_params = [{transform_indices = @transform_0, window_bounds = array<i64: 16, 128>}, {pipeline_mode = #tpu.pipeline_mode<synchronous>, transform_indices = @transform_1, window_bounds = array<i64: 128, 128>}, {transform_indices = @transform_2, window_bounds = array<i64: 16, 4>}, {pipeline_mode = #tpu.pipeline_mode<synchronous>, transform_indices = @transform_3, window_bounds = array<i64: 4, 128>}, {transform_indices = @transform_4, window_bounds = array<i64: 16, 128>}]} {
    %c0 = arith.constant 0 : index
    %c0_0 = arith.constant 0 : index
    %0 = vector.load %arg1[%c0, %c0_0] : memref<16x128xf32, #tpu.memory_space<vmem>>, vector<16x128xf32>
    %cst = arith.constant dense<0xFF800000> : vector<16xf32>
    %1 = vector.multi_reduction <maximumf>, %0, %cst [1] : vector<16x128xf32> to vector<16xf32>
    %2 = vector.shape_cast %1 : vector<16xf32> to vector<16x1xf32>
    %3 = vector.broadcast %2 : vector<16x1xf32> to vector<16x128xf32>
    %4 = arith.subf %0, %3 : vector<16x128xf32>
    %5 = math.exp %4 : vector<16x128xf32>
    %cst_1 = arith.constant dense<0.000000e+00> : vector<16xf32>
    %6 = vector.multi_reduction <add>, %5, %cst_1 [1] : vector<16x128xf32> to vector<16xf32>
    %7 = vector.shape_cast %6 : vector<16xf32> to vector<16x1xf32>
    %8 = tpu.reciprocal %7 {approx = true} : vector<16x1xf32> -> vector<16x1xf32>
    %9 = vector.broadcast %8 : vector<16x1xf32> to vector<16x128xf32>
    %10 = arith.mulf %5, %9 : vector<16x128xf32>
    %11 = arith.truncf %10 : vector<16x128xf32> to vector<16x128xbf16>
    %c0_2 = arith.constant 0 : index
    %c0_3 = arith.constant 0 : index
    %12 = vector.load %arg2[%c0_2, %c0_3] : memref<128x128xbf16, #tpu.memory_space<vmem>>, vector<128x128xbf16>
    %cst_4 = arith.constant dense<0.000000e+00> : vector<16x128xf32>
    %13 = tpu.matmul %11, %12, %cst_4 {dimension_numbers = #tpu.dot_dimension_numbers<[1], [0], [0], [1], [0, 0, 1, 1], [], []>} : vector<16x128xbf16>, vector<128x128xbf16>, vector<16x128xf32> -> vector<16x128xf32>
    %c0_5 = arith.constant 0 : index
    %c0_6 = arith.constant 0 : index
    %14 = vector.load %arg3[%c0_5, %c0_6] : memref<16x4xf32, #tpu.memory_space<vmem>>, vector<16x4xf32>
    %c0_7 = arith.constant 0 : index
    %c0_8 = arith.constant 0 : index
    %15 = vector.load %arg4[%c0_7, %c0_8] : memref<4x128xf32, #tpu.memory_space<vmem>>, vector<4x128xf32>
    %16 = vector.extract_strided_slice %14 {offsets = [0, 0], sizes = [16, 1], strides = [1, 1]} : vector<16x4xf32> to vector<16x1xf32>
    %17 = vector.extract_strided_slice %14 {offsets = [0, 1], sizes = [16, 1], strides = [1, 1]} : vector<16x4xf32> to vector<16x1xf32>
    %18 = vector.extract_strided_slice %14 {offsets = [0, 2], sizes = [16, 1], strides = [1, 1]} : vector<16x4xf32> to vector<16x1xf32>
    %19 = vector.extract_strided_slice %14 {offsets = [0, 3], sizes = [16, 1], strides = [1, 1]} : vector<16x4xf32> to vector<16x1xf32>
    %20 = vector.extract_strided_slice %15 {offsets = [0, 0], sizes = [1, 128], strides = [1, 1]} : vector<4x128xf32> to vector<1x128xf32>
    %21 = vector.extract_strided_slice %15 {offsets = [1, 0], sizes = [1, 128], strides = [1, 1]} : vector<4x128xf32> to vector<1x128xf32>
    %22 = vector.extract_strided_slice %15 {offsets = [2, 0], sizes = [1, 128], strides = [1, 1]} : vector<4x128xf32> to vector<1x128xf32>
    %23 = vector.extract_strided_slice %15 {offsets = [3, 0], sizes = [1, 128], strides = [1, 1]} : vector<4x128xf32> to vector<1x128xf32>
    %24 = vector.broadcast %16 : vector<16x1xf32> to vector<16x128xf32>
    %25 = vector.broadcast %20 : vector<1x128xf32> to vector<16x128xf32>
    %26 = arith.subf %24, %25 : vector<16x128xf32>
    %27 = math.absf %26 : vector<16x128xf32>
    %28 = vector.broadcast %17 : vector<16x1xf32> to vector<16x128xf32>
    %29 = vector.broadcast %21 : vector<1x128xf32> to vector<16x128xf32>
    %30 = arith.subf %28, %29 : vector<16x128xf32>
    %31 = math.absf %30 : vector<16x128xf32>
    %32 = arith.addf %27, %31 : vector<16x128xf32>
    %33 = vector.broadcast %18 : vector<16x1xf32> to vector<16x128xf32>
    %34 = vector.broadcast %22 : vector<1x128xf32> to vector<16x128xf32>
    %35 = arith.subf %33, %34 : vector<16x128xf32>
    %36 = math.absf %35 : vector<16x128xf32>
    %37 = arith.addf %32, %36 : vector<16x128xf32>
    %38 = vector.broadcast %19 : vector<16x1xf32> to vector<16x128xf32>
    %39 = vector.broadcast %23 : vector<1x128xf32> to vector<16x128xf32>
    %40 = arith.subf %38, %39 : vector<16x128xf32>
    %41 = math.absf %40 : vector<16x128xf32>
    %42 = arith.addf %37, %41 : vector<16x128xf32>
    %cst_9 = arith.constant 5.000000e-01 : f32
    %43 = vector.broadcast %cst_9 : f32 to vector<16x1xf32>
    %44 = arith.mulf %43, %18 : vector<16x1xf32>
    %45 = arith.subf %16, %44 : vector<16x1xf32>
    %cst_10 = arith.constant 5.000000e-01 : f32
    %46 = vector.broadcast %cst_10 : f32 to vector<16x1xf32>
    %47 = arith.mulf %46, %18 : vector<16x1xf32>
    %48 = arith.addf %16, %47 : vector<16x1xf32>
    %cst_11 = arith.constant 5.000000e-01 : f32
    %49 = vector.broadcast %cst_11 : f32 to vector<16x1xf32>
    %50 = arith.mulf %49, %19 : vector<16x1xf32>
    %51 = arith.subf %17, %50 : vector<16x1xf32>
    %cst_12 = arith.constant 5.000000e-01 : f32
    %52 = vector.broadcast %cst_12 : f32 to vector<16x1xf32>
    %53 = arith.mulf %52, %19 : vector<16x1xf32>
    %54 = arith.addf %17, %53 : vector<16x1xf32>
    %cst_13 = arith.constant 5.000000e-01 : f32
    %55 = vector.broadcast %cst_13 : f32 to vector<1x128xf32>
    %56 = arith.mulf %55, %22 : vector<1x128xf32>
    %57 = arith.subf %20, %56 : vector<1x128xf32>
    %cst_14 = arith.constant 5.000000e-01 : f32
    %58 = vector.broadcast %cst_14 : f32 to vector<1x128xf32>
    %59 = arith.mulf %58, %22 : vector<1x128xf32>
    %60 = arith.addf %20, %59 : vector<1x128xf32>
    %cst_15 = arith.constant 5.000000e-01 : f32
    %61 = vector.broadcast %cst_15 : f32 to vector<1x128xf32>
    %62 = arith.mulf %61, %23 : vector<1x128xf32>
    %63 = arith.subf %21, %62 : vector<1x128xf32>
    %cst_16 = arith.constant 5.000000e-01 : f32
    %64 = vector.broadcast %cst_16 : f32 to vector<1x128xf32>
    %65 = arith.mulf %64, %23 : vector<1x128xf32>
    %66 = arith.addf %21, %65 : vector<1x128xf32>
    %67 = arith.subf %48, %45 : vector<16x1xf32>
    %68 = arith.subf %54, %51 : vector<16x1xf32>
    %69 = arith.mulf %67, %68 : vector<16x1xf32>
    %70 = arith.subf %60, %57 : vector<1x128xf32>
    %71 = arith.subf %66, %63 : vector<1x128xf32>
    %72 = arith.mulf %70, %71 : vector<1x128xf32>
    %73 = vector.broadcast %48 : vector<16x1xf32> to vector<16x128xf32>
    %74 = vector.broadcast %60 : vector<1x128xf32> to vector<16x128xf32>
    %75 = arith.minimumf %73, %74 : vector<16x128xf32>
    %76 = vector.broadcast %45 : vector<16x1xf32> to vector<16x128xf32>
    %77 = vector.broadcast %57 : vector<1x128xf32> to vector<16x128xf32>
    %78 = arith.maximumf %76, %77 : vector<16x128xf32>
    %79 = arith.subf %75, %78 : vector<16x128xf32>
    %cst_17 = arith.constant 0.000000e+00 : f32
    %80 = vector.broadcast %cst_17 : f32 to vector<16x128xf32>
    %81 = arith.maximumf %79, %80 : vector<16x128xf32>
    %82 = vector.broadcast %54 : vector<16x1xf32> to vector<16x128xf32>
    %83 = vector.broadcast %66 : vector<1x128xf32> to vector<16x128xf32>
    %84 = arith.minimumf %82, %83 : vector<16x128xf32>
    %85 = vector.broadcast %51 : vector<16x1xf32> to vector<16x128xf32>
    %86 = vector.broadcast %63 : vector<1x128xf32> to vector<16x128xf32>
    %87 = arith.maximumf %85, %86 : vector<16x128xf32>
    %88 = arith.subf %84, %87 : vector<16x128xf32>
    %cst_18 = arith.constant 0.000000e+00 : f32
    %89 = vector.broadcast %cst_18 : f32 to vector<16x128xf32>
    %90 = arith.maximumf %88, %89 : vector<16x128xf32>
    %91 = arith.mulf %81, %90 : vector<16x128xf32>
    %92 = vector.broadcast %69 : vector<16x1xf32> to vector<16x128xf32>
    %93 = vector.broadcast %72 : vector<1x128xf32> to vector<16x128xf32>
    %94 = arith.addf %92, %93 : vector<16x128xf32>
    %95 = arith.subf %94, %91 : vector<16x128xf32>
    %cst_19 = arith.constant 9.99999993E-9 : f32
    %96 = vector.broadcast %cst_19 : f32 to vector<16x128xf32>
    %97 = arith.addf %95, %96 : vector<16x128xf32>
    %98 = tpu.reciprocal %97 {approx = true} : vector<16x128xf32> -> vector<16x128xf32>
    %99 = arith.mulf %91, %98 : vector<16x128xf32>
    %100 = vector.broadcast %48 : vector<16x1xf32> to vector<16x128xf32>
    %101 = vector.broadcast %60 : vector<1x128xf32> to vector<16x128xf32>
    %102 = arith.maximumf %100, %101 : vector<16x128xf32>
    %103 = vector.broadcast %45 : vector<16x1xf32> to vector<16x128xf32>
    %104 = vector.broadcast %57 : vector<1x128xf32> to vector<16x128xf32>
    %105 = arith.minimumf %103, %104 : vector<16x128xf32>
    %106 = arith.subf %102, %105 : vector<16x128xf32>
    %cst_20 = arith.constant 0.000000e+00 : f32
    %107 = vector.broadcast %cst_20 : f32 to vector<16x128xf32>
    %108 = arith.maximumf %106, %107 : vector<16x128xf32>
    %109 = vector.broadcast %54 : vector<16x1xf32> to vector<16x128xf32>
    %110 = vector.broadcast %66 : vector<1x128xf32> to vector<16x128xf32>
    %111 = arith.maximumf %109, %110 : vector<16x128xf32>
    %112 = vector.broadcast %51 : vector<16x1xf32> to vector<16x128xf32>
    %113 = vector.broadcast %63 : vector<1x128xf32> to vector<16x128xf32>
    %114 = arith.minimumf %112, %113 : vector<16x128xf32>
    %115 = arith.subf %111, %114 : vector<16x128xf32>
    %cst_21 = arith.constant 0.000000e+00 : f32
    %116 = vector.broadcast %cst_21 : f32 to vector<16x128xf32>
    %117 = arith.maximumf %115, %116 : vector<16x128xf32>
    %118 = arith.mulf %108, %117 : vector<16x128xf32>
    %119 = arith.subf %118, %95 : vector<16x128xf32>
    %cst_22 = arith.constant 9.99999993E-9 : f32
    %120 = vector.broadcast %cst_22 : f32 to vector<16x128xf32>
    %121 = arith.addf %118, %120 : vector<16x128xf32>
    %122 = tpu.reciprocal %121 {approx = true} : vector<16x128xf32> -> vector<16x128xf32>
    %123 = arith.mulf %119, %122 : vector<16x128xf32>
    %cst_23 = arith.constant 1.000000e+00 : f32
    %124 = vector.broadcast %cst_23 : f32 to vector<16x128xf32>
    %125 = arith.mulf %124, %42 : vector<16x128xf32>
    %126 = arith.addf %125, %13 : vector<16x128xf32>
    %127 = arith.subf %123, %99 : vector<16x128xf32>
    %cst_24 = arith.constant 1.000000e+00 : f32
    %128 = vector.broadcast %cst_24 : f32 to vector<16x128xf32>
    %129 = arith.mulf %128, %127 : vector<16x128xf32>
    %130 = arith.addf %126, %129 : vector<16x128xf32>
    %c0_25 = arith.constant 0 : index
    %c0_26 = arith.constant 0 : index
    %131 = vector.load %arg5[%c0_25, %c0_26] : memref<16x128xf32, #tpu.memory_space<vmem>>, vector<16x128xf32>
    tpu.vector_store %arg5[%c0_25, %c0_26], %130 {strides = array<i32>} : memref<16x128xf32, #tpu.memory_space<vmem>>, vector<16x128xf32>,
    return
  }
  func.func @transform_0(%arg0: i32) -> (i32, i32) {
    %c0_i32 = arith.constant 0 : i32
    %c0_i32_0 = arith.constant 0 : i32
    return %arg0, %c0_i32 : i32, i32
  }
  func.func @transform_1(%arg0: i32) -> (i32, i32) {
    %c0_i32 = arith.constant 0 : i32
    %c0_i32_0 = arith.constant 0 : i32
    %c0_i32_1 = arith.constant 0 : i32
    return %c0_i32, %c0_i32_0 : i32, i32
  }
  func.func @transform_2(%arg0: i32) -> (i32, i32) {
    %c0_i32 = arith.constant 0 : i32
    %c0_i32_0 = arith.constant 0 : i32
    return %arg0, %c0_i32 : i32, i32
  }
  func.func @transform_3(%arg0: i32) -> (i32, i32) {
    %c0_i32 = arith.constant 0 : i32
    %c0_i32_0 = arith.constant 0 : i32
    %c0_i32_1 = arith.constant 0 : i32
    return %c0_i32, %c0_i32_0 : i32, i32
  }
  func.func @transform_4(%arg0: i32) -> (i32, i32) {
    %c0_i32 = arith.constant 0 : i32
    %c0_i32_0 = arith.constant 0 : i32
    return %arg0, %c0_i32 : i32, i32
  }
}

</mosaic_0001>

<bundles_post_ra>
// kernel: tpu_custom_call.1
= control target key start
LH: loop header
LB: loop body
LE: loop exit
PB: predicated region body
PF: predicated region fallthrough
CT: control target
= control target key end

     0   :  { %9 = vsyncpa [#allocation3], 0  ;;  %s687_s0 = inlined_call_operand.vmem [shape: f32[16,128], index: 0, kind: input, shape index: {}]   ;;  %s688_s1 = inlined_call_operand.hbm [shape: bf16[128,128], index: 1, kind: input, shape index: {}]   ;;  %s689_s2 = inlined_call_operand.vmem [shape: f32[16,4], index: 2, kind: input, shape index: {}]   ;;  %s690_s3 = inlined_call_operand.vmem [shape: f32[4,128], index: 3, kind: input, shape index: {}]   ;;  %s691_s4 = inlined_call_operand.hbm [shape: f32[16,128], index: 4, kind: output, shape index: {}]  }
   0x1   :  { %10 = vsyncpa [#allocation4], 0  ;;  %s550_s15 = smov [#allocation2]   ;;  %s502_s19 = scalar_lea.hbm %s688_s1, 1024 }
   0x2   :  { %s18_s16 = sshll.u32 %s550_s15, 4  ;;  %p503_p0 = scmp.ne.s32.totalorder %s688_s1, %s502_s19  ;;  %s19_s16 = int_to_ptr.vmem [resolvable:$true] %s18_s16 }
   0x3   :  { %p506_p1 = scmp.lt.u32.totalorder %s502_s19, %s688_s1 }
   0x5   :  { %p508_p2 = pnand %p506_p1, %p503_p0 }
   0x7   :  { %511 = shalt.err (!%p508_p2)
}
   0x8   :  { %s512_s24 = scalar_lea.vmem %s19_s16, 1024  ;;  %p517_p4 = scmp.lt.s32.totalorder %s19_s16, %s19_s16 }
   0x9   :  { %p513_p3 = scmp.ne.s32.totalorder %s19_s16, %s512_s24  ;;  %p518_p5 = scmp.lt.s32.totalorder %s512_s24, %s512_s24 }
   0xb   :  { %p519_p6 = por %p518_p5, %p517_p4 }
   0xd   :  { %p520_p7 = pnand %p519_p6, %p513_p3 }
   0xf   :  { %523 = shalt.err (!%p520_p7)
}
  0x10   :  { %s551_s25 = smov 64   ;;  %s552_s26 = smov 4  }
  0x11   :  { %24 = dma.hbm_to_vmem [thread:$0]  %s688_s1, 1024, %s19_s16, [#allocation3], %s551_s25, %s551_s25, %s552_s26  }
  0x12   :  { %546 = dma.done.wait [#allocation3], 1024  }
  0x13   :  { %547 = vsyncadd [#allocation3], 4294966272  ;;  %v33_v0 = vld [vmem:[%s687_s0] sm:$0xff]  ;;  %v34_v1 = vld [vmem:[%s687_s0 + $0x8] sm:$0xff]  ;;  %s553_s1 = smov 126   ;;  %v554_v5 = vmov 0.0   ;;  %v172_v49 = vlaneseq }
  0x14   :  { %35 = vmax.xlane.f32.xlu0 %v33_v0  ;;  %v610_v2 = vld [vmem:[%s689_s2] sm:$0xff]  ;;  %433 = vmatprep.subr.bf16.mxu0 %v554_v5  ;;  %v479_v6 = vld [vmem:[#allocation2 + $0x8] sm:$0xff]   ;;  %v480_v7 = vld [vmem:[#allocation2 + $0x10] sm:$0xff]   ;;  %v555_v25 = vmov 1   ;;  %v557_v27 = vmov 0   ;;  %vm558_vm0 = vmmov 0  }
  0x15   :  { %v234_v3 = vmul.f32 0.5, %v610_v2  ;;  %v478_v4 = vld [vmem:[#allocation2] sm:$0xff]   ;;  %v481_v16 = vld [vmem:[#allocation2 + $0x18] sm:$0xff]   ;;  %v617_v18 = vld [vmem:[%s689_s2 + $0x8] sm:$0xff]  ;;  %469 = vset.pattern.permute.xlu0 %v555_v25  ;;  %s556_s2 = smov 127   ;;  %467 = vset.pattern.permute.xlu1 %v557_v27  ;;  %v559_v42 = vmov 3  }
  0x16   :  { %434 = vmatpush3.bf16.msra.mxu0 %v478_v4  ;;  %v482_v19 = vld [vmem:[#allocation2 + $0x20] sm:$0xff]   ;;  %v235_v22 = vmul.f32 0.5, %v617_v18  ;;  %v483_v23 = vld [vmem:[#allocation2 + $0x28] sm:$0xff]   ;;  %v484_v26 = vld [vmem:[#allocation2 + $0x30] sm:$0xff]   ;;  %449 = vmatprep.mubr.msk.bf16.mxu0 %vm558_vm0, %v554_v5  ;;  %v560_v45 = vmov 2   ;;  %v641_v52 = vshrl.u32 %v172_v49, 7 }
  0x17   :  { %435 = vmatprep.subr.bf16.mxu0 %v554_v5  ;;  %v485_v28 = vld [vmem:[#allocation2 + $0x38] sm:$0xff]   ;;  %v638_v47 = vld [vmem:[%s690_s3] sm:$0xf]  ;;  %s561_s3 = smov [#allocation5]  }
  0x18   :  { %37 = vmax.xlane.f32.xlu0 %v34_v1  ;;  %v248_v51 = vmul.f32 0.5, %v638_v47  ;;  %v644_v56 = vsub.s32 1, %v641_v52  ;;  %v649_v59 = vsub.s32 0, %v641_v52  ;;  %s404_s12 = sshll.u32 %s561_s3, 4  ;;  %s405_s12 = int_to_ptr.vmem [resolvable:$true] %s404_s12 }
  0x19   :  { %s524_s13 = scalar_lea.vmem %s405_s12, 256  ;;  %p529_p9 = scmp.lt.s32.totalorder %s405_s12, %s405_s12 }
  0x1a   :  { %436 = vmatpush3.bf16.msra.mxu0 %v479_v6  ;;  %v250_v54 = vrot.slane %v248_v51, 2  ;;  %p525_p8 = scmp.ne.s32.totalorder %s405_s12, %s524_s13  ;;  %p530_p10 = scmp.lt.s32.totalorder %s524_s13, %s524_s13 }
  0x1b   :  { %437 = vmatprep.subr.bf16.mxu0 %v554_v5 }
  0x1c   :  { %v252_v57 = vsub.f32 %v638_v47, %v250_v54  ;;  %v253_v58 = vadd.f32 %v250_v54, %v638_v47  ;;  %p531_p11 = por %p530_p10, %p529_p9 }
  0x1e   :  { %438 = vmatpush3.bf16.msra.mxu0 %v480_v7  ;;  %v332_v60 = vrot.slane %v252_v57, %v644_v56  ;;  %v284_v6 = vrot.slane %v253_v58, %v649_v59  ;;  %p532_p12 = pnand %p531_p11, %p525_p8 }
  0x1f   :  { %439 = vmatprep.subr.bf16.mxu0 %v554_v5 }
  0x22   :  { %440 = vmatpush3.bf16.msra.mxu0 %v481_v16 }
  0x23   :  { %441 = vmatprep.subr.bf16.mxu0 %v554_v5 }
  0x26   :  { %442 = vmatpush3.bf16.msra.mxu0 %v482_v19 }
  0x27   :  { %443 = vmatprep.subr.bf16.mxu0 %v554_v5 }
  0x2a   :  { %444 = vmatpush3.bf16.msra.mxu0 %v483_v23 }
  0x2b   :  { %445 = vmatprep.subr.bf16.mxu0 %v554_v5 }
  0x2e   :  { %238 = vrot.lane.b32.xlu0 %v234_v3, %s553_s1  ;;  %446 = vmatpush3.bf16.msra.mxu0 %v484_v26 }
  0x2f   :  { %447 = vmatprep.subr.bf16.mxu0 %v554_v5  ;;  %v318_v5 = vrot.slane %v253_v58, %v644_v56 }
  0x32   :  { %448 = vmatpush3.bf16.msra.mxu0 %v485_v28 }
  0xa1   :  { %v36_v8 = vpop.xlane.xlu0 %35 }
  0xa2   :  { %v39_v9 = vsub.f32 %v33_v0, %v36_v8  ;;  %v300_v0 = vrot.slane %v252_v57, %v649_v59 }
  0xa4   :  { %v41_v10 = vmul.f32 1.442695, %v39_v9 }
  0xa5   :  { %v38_v11 = vpop.xlane.xlu0 %37 }
  0xa6   :  { %486 = vpow2.f32 %v41_v10  ;;  %v40_v12 = vsub.f32 %v34_v1, %v38_v11  ;;  %v266_v1 = vsub.f32 %v253_v58, %v252_v57 }
  0xa8   :  { %v43_v13 = vmul.f32 1.442695, %v40_v12  ;;  %v268_v10 = vrot.slane %v266_v1, 1 }
  0xa9   :  { %v239_v17 = vpop.permute.xlu0 %238 }
  0xaa   :  { %488 = vpow2.f32 %v43_v13  ;;  %v244_v20 = vsub.f32 %v610_v2, %v239_v17  ;;  %v246_v21 = vadd.f32 %v239_v17, %v610_v2 }
  0xac   :  { %v254_v24 = vsub.f32 %v246_v21, %v244_v20 }
  0xb0   :  { %v487_v14 = vpop.eup %486 }
  0xb1   :  { %45 = vadd.xlane.f32.xlu1 %v487_v14 }
  0xb4   :  { %v489_v15 = vpop.eup %488 }
  0xb5   :  { %47 = vadd.xlane.f32.xlu1 %v489_v15 }
  0xc6   :  { %240 = vrot.lane.b32.xlu1 %v235_v22, %s553_s1 }
  0xca   :  { %258 = vrot.lane.b32.xlu1 %v254_v24, %s556_s2 }
 0x13e   :  { %v46_v29 = vpop.xlane.xlu1 %45 }
 0x13f   :  { %490 = vrcp.f32 %v46_v29 }
 0x142   :  { %v48_v30 = vpop.xlane.xlu1 %47 }
 0x143   :  { %492 = vrcp.f32 %v48_v30 }
 0x146   :  { %v241_v31 = vpop.permute.xlu1 %240 }
 0x147   :  { %v245_v32 = vsub.f32 %v617_v18, %v241_v31  ;;  %v247_v33 = vadd.f32 %v241_v31, %v617_v18 }
 0x149   :  { %312 = vperm.xlu0 %469, %v247_v33   ;;  %v255_v34 = vsub.f32 %v247_v33, %v245_v32  ;;  %v491_v35 = vpop.eup %490 }
 0x14a   :  { %v51_v37 = vmul.f32 %v491_v35, %v487_v14  ;;  %v259_v40 = vpop.permute.xlu1 %258 }
 0x14b   :  { %260 = vrot.lane.b32.xlu1 %v255_v34, %s556_s2  ;;  %v264_v41 = vmul.f32 %v259_v40, %v254_v24 }
 0x14d   :  { %v493_v36 = vpop.eup %492  ;;  %470 = vset.pattern.permute.xlu0 %v557_v27 }
 0x14e   :  { %273 = vperm.xlu0 %470, %v246_v21   ;;  %v52_v38 = vmul.f32 %v493_v36, %v489_v15  ;;  %v270_v15 = vmul.f32 %v268_v10, %v266_v1  ;;  %v175_v1 = vrot.slane %v638_v47, %v649_v59 }
 0x14f   :  { %278 = vperm.xlu1 %467, %v247_v33  }
 0x150   :  { %v53_v39 = vpack.c.bf16 %v52_v38, %v51_v37  ;;  %v354_v23 = vrot.slane %v270_v15, %v649_v59 }
 0x152   :  { %450 = vmatmul.mubr.bf16.vlgmr.msra.gmra.mrb[0].mxu0 %v53_v39  ;;  %294 = vperm.xlu0 %470, %v245_v32  }
 0x153   :  { %289 = vperm.xlu1 %467, %v244_v20  }
 0x156   :  { %169 = vperm.xlu0 %470, %v617_v18  }
 0x157   :  { %468 = vset.pattern.permute.xlu1 %v555_v25 }
 0x158   :  { %308 = vperm.xlu1 %468, %v246_v21  }
 0x15a   :  { %343 = vperm.xlu0 %470, %v264_v41  }
 0x15c   :  { %322 = vperm.xlu1 %468, %v244_v20  }
 0x15e   :  { %473 = vset.pattern.permute.xlu0 %v555_v25 }
 0x15f   :  { %185 = vperm.xlu0 %473, %v617_v18  }
 0x160   :  { %326 = vperm.xlu1 %468, %v245_v32  }
 0x163   :  { %475 = vset.pattern.permute.xlu0 %v559_v42 }
 0x164   :  { %471 = vset.pattern.permute.xlu1 %v557_v27  ;;  %217 = vperm.xlu0 %475, %v610_v2  }
 0x165   :  { %164 = vperm.xlu1 %471, %v610_v2  }
 0x168   :  { %477 = vset.pattern.permute.xlu0 %v557_v27 }
 0x1bd   :  { %v261_v43 = vpop.permute.xlu1 %260 }
 0x1be   :  { %v265_v44 = vmul.f32 %v261_v43, %v255_v34 }
 0x1c0   :  { %348 = vperm.xlu1 %471, %v265_v44  }
 0x1c4   :  { %472 = vset.pattern.permute.xlu1 %v555_v25 }
 0x1c5   :  { %181 = vperm.xlu1 %472, %v610_v2  }
 0x1c8   :  { %v313_v50 = vpop.permute.xlu0 %312 }
 0x1c9   :  { %474 = vset.pattern.permute.xlu1 %v560_v45  ;;  %v320_v29 = vmin.f32 %v313_v50, %v318_v5  ;;  %v374_v39 = vmax.f32 %v313_v50, %v318_v5 }
 0x1ca   :  { %199 = vperm.xlu1 %474, %v610_v2  }
 0x1cd   :  { %v274_v55 = vpop.permute.xlu0 %273 }
 0x1ce   :  { %203 = vperm.xlu1 %474, %v617_v18   ;;  %v633_v46 = vpop.permute.xlu1 %278  ;;  %v285_v11 = vmin.f32 %v274_v55, %v284_v6  ;;  %v365_v21 = vmax.f32 %v274_v55, %v284_v6 }
 0x1cf   :  { %v286_v33 = vmin.f32 %v633_v46, %v284_v6  ;;  %v366_v43 = vmax.f32 %v633_v46, %v284_v6  ;;  %v191_v46 = vrot.slane %v638_v47, %v644_v56 }
 0x1d1   :  { %v295_v3 = vpop.permute.xlu0 %294 }
 0x1d2   :  { %476 = vset.pattern.permute.xlu1 %v559_v42  ;;  %v290_v48 = vpop.permute.xlu1 %289  ;;  %v302_v30 = vmax.f32 %v295_v3, %v300_v0  ;;  %v368_v41 = vmin.f32 %v295_v3, %v300_v0 }
 0x1d3   :  { %221 = vperm.xlu1 %476, %v617_v18   ;;  %v301_v8 = vmax.f32 %v290_v48, %v300_v0  ;;  %v367_v17 = vmin.f32 %v290_v48, %v300_v0  ;;  %v208_v0 = vsub.s32 2, %v641_v52 }
 0x1d4   :  { %v304_v40 = vsub.f32 %v286_v33, %v302_v30  ;;  %v370_v51 = vsub.f32 %v366_v43, %v368_v41 }
 0x1d5   :  { %v659_v13 = vpop.permute.xlu0 %169  ;;  %v303_v14 = vsub.f32 %v285_v11, %v301_v8  ;;  %v369_v27 = vsub.f32 %v365_v21, %v367_v17  ;;  %v209_v10 = vrot.slane %v638_v47, %v208_v0 }
 0x1d6   :  { %v306_v49 = vmax.f32 %v304_v40, 0.0  ;;  %v372_v50 = vmax.f32 %v370_v51, 0.0  ;;  %v177_v59 = vsub.f32 %v659_v13, %v175_v1 }
 0x1d7   :  { %v309_v53 = vpop.permute.xlu1 %308  ;;  %v305_v22 = vmax.f32 %v303_v14, 0.0  ;;  %v371_v36 = vmax.f32 %v369_v27, 0.0 }
 0x1d8   :  { %v319_v9 = vmin.f32 %v309_v53, %v318_v5  ;;  %v373_v18 = vmax.f32 %v309_v53, %v318_v5 }
 0x1d9   :  { %v344_v25 = vpop.permute.xlu0 %343 }
 0x1da   :  { %v355_v31 = vadd.f32 %v354_v23, %v344_v25 }
 0x1db   :  { %v323_v62 = vpop.permute.xlu1 %322 }
 0x1dc   :  { %v333_v7 = vmax.f32 %v323_v62, %v332_v60  ;;  %v375_v16 = vmin.f32 %v323_v62, %v332_v60 }
 0x1de   :  { %v335_v12 = vsub.f32 %v319_v9, %v333_v7  ;;  %v377_v24 = vsub.f32 %v373_v18, %v375_v16  ;;  %v186_v62 = vpop.permute.xlu0 %185 }
 0x1df   :  { %v327_v20 = vpop.permute.xlu1 %326  ;;  %v193_v17 = vsub.f32 %v186_v62, %v191_v46 }
 0x1e0   :  { %v337_v19 = vmax.f32 %v335_v12, 0.0  ;;  %v334_v26 = vmax.f32 %v327_v20, %v332_v60  ;;  %v379_v32 = vmax.f32 %v377_v24, 0.0  ;;  %v376_v35 = vmin.f32 %v327_v20, %v332_v60 }
 0x1e1   :  { %v226_v60 = vsub.s32 3, %v641_v52  ;;  %v195_v27 = vand.u32 2147483647, %v193_v17 }
 0x1e2   :  { %v339_v28 = vmul.f32 %v337_v19, %v305_v22  ;;  %v336_v34 = vsub.f32 %v320_v29, %v334_v26  ;;  %v381_v42 = vmul.f32 %v379_v32, %v371_v36  ;;  %v378_v45 = vsub.f32 %v374_v39, %v376_v35 }
 0x1e3   :  { %v227_v6 = vrot.slane %v638_v47, %v226_v60  ;;  %v218_v8 = vpop.permute.xlu0 %217  ;;  %v179_v26 = vand.u32 2147483647, %v177_v59 }
 0x1e4   :  { %v357_v37 = vsub.f32 %v355_v31, %v339_v28  ;;  %v165_v38 = vpop.permute.xlu1 %164  ;;  %v338_v44 = vmax.f32 %v336_v34, 0.0  ;;  %v385_v53 = vadd.f32 1e-08, %v381_v42  ;;  %v380_v55 = vmax.f32 %v378_v45, 0.0 }
 0x1e5   :  { %v176_v9 = vsub.f32 %v165_v38, %v175_v1  ;;  %v228_v12 = vsub.f32 %v218_v8, %v227_v6  ;;  %v197_v35 = vadd.f32 %v195_v27, %v179_v26 }
 0x1e6   :  { %v359_v48 = vadd.f32 1e-08, %v357_v37  ;;  %v340_v57 = vmul.f32 %v338_v44, %v306_v49  ;;  %v382_v3 = vmul.f32 %v380_v55, %v372_v50  ;;  %v383_v24 = vsub.f32 %v381_v42, %v357_v37 }
 0x1e7   :  { %v178_v15 = vand.u32 2147483647, %v176_v9  ;;  %v230_v20 = vand.u32 2147483647, %v228_v12 }
 0x1e8   :  { %494 = vrcp.f32 %v359_v48  ;;  %v386_v11 = vadd.f32 1e-08, %v382_v3 }
 0x1e9   :  { %496 = vrcp.f32 %v385_v53 }
 0x1f2   :  { %v495_v16 = vpop.eup %494 }
 0x1f3   :  { %v497_v21 = vpop.eup %496 }
 0x1f4   :  { %v389_v29 = vmul.f32 %v497_v21, %v383_v24 }
 0x225   :  { %v652_v61 = vpop.f32.mrb[0].mxu0 }
 0x226   :  { %v451_v63 = vpop.f32.mrb[1].mxu0 }
 0x227   :  { %v655_v2 = vpop.f32.mrb[2].mxu0 }
 0x228   :  { %v452_v4 = vpop.f32.mrb[3].mxu0 }
 0x23f   :  { %v349_v54 = vpop.permute.xlu1 %348 }
 0x240   :  { %v356_v58 = vadd.f32 %v354_v23, %v349_v54  ;;  %v363_v23 = vmul.f32 %v495_v16, %v339_v28 }
 0x242   :  { %v358_v63 = vsub.f32 %v356_v58, %v340_v57  ;;  %v393_v33 = vsub.f32 %v389_v29, %v363_v23 }
 0x244   :  { %v360_v4 = vadd.f32 1e-08, %v358_v63  ;;  %v182_v5 = vpop.permute.xlu1 %181  ;;  %v384_v36 = vsub.f32 %v382_v3, %v358_v63 }
 0x245   :  { %v192_v7 = vsub.f32 %v182_v5, %v191_v46 }
 0x246   :  { %498 = vrcp.f32 %v360_v4 }
 0x247   :  { %v194_v52 = vand.u32 2147483647, %v192_v7  ;;  %500 = vrcp.f32 %v386_v11 }
 0x249   :  { %v200_v14 = vpop.permute.xlu1 %199  ;;  %v196_v18 = vadd.f32 %v194_v52, %v178_v15 }
 0x24a   :  { %v210_v56 = vsub.f32 %v200_v14, %v209_v10 }
 0x24c   :  { %v212_v19 = vand.u32 2147483647, %v210_v56 }
 0x24d   :  { %v204_v22 = vpop.permute.xlu1 %203 }
 0x24e   :  { %v214_v47 = vadd.f32 %v212_v19, %v196_v18  ;;  %v211_v25 = vsub.f32 %v204_v22, %v209_v10 }
 0x250   :  { %v232_v30 = vadd.f32 %v230_v20, %v214_v47  ;;  %v213_v31 = vand.u32 2147483647, %v211_v25  ;;  %v499_v32 = vpop.eup %498 }
 0x251   :  { %v364_v40 = vmul.f32 %v499_v32, %v340_v57  ;;  %v501_v37 = vpop.eup %500 }
 0x252   :  { %v391_v13 = vadd.f32 %v232_v30, %v652_v61  ;;  %v222_v34 = vpop.permute.xlu1 %221  ;;  %v215_v41 = vadd.f32 %v213_v31, %v197_v35  ;;  %v390_v42 = vmul.f32 %v501_v37, %v384_v36 }
 0x253   :  { %v229_v38 = vsub.f32 %v222_v34, %v227_v6 }
 0x254   :  { %v395_v39 = vadd.f32 %v393_v33, %v391_v13  ;;  %v394_v44 = vsub.f32 %v390_v42, %v364_v40 }
 0x255   :  { %v231_v28 = vand.u32 2147483647, %v229_v38 }
 0x256   :  { %397 = vst [vmem:[#allocation5] sm:$0xff] %v395_v39 }
 0x257   :  { %v233_v43 = vadd.f32 %v231_v28, %v215_v41 }
 0x259   :  { %v392_v45 = vadd.f32 %v233_v43, %v655_v2 }
 0x25b   :  { %v396_v48 = vadd.f32 %v394_v44, %v392_v45 }
 0x25d   :  { %398 = vst [vmem:[#allocation5 + $0x8] sm:$0xff] %v396_v48 }
 0x25e   :  { %535 = shalt.err (!%p532_p12)
}
 0x25f   :  { %s536_s16 = scalar_lea.hbm %s691_s4, 256 }
 0x260   :  { %p537_p13 = scmp.ne.s32.totalorder %s691_s4, %s536_s16  ;;  %p540_p0 = scmp.lt.u32.totalorder %s536_s16, %s691_s4 }
 0x262   :  { %p542_p1 = pnand %p540_p0, %p537_p13 }
 0x264   :  { %545 = shalt.err (!%p542_p1)
}
 0x265   :  { %s562_s21 = smov 128   ;;  %s563_s22 = smov 8  }
 0x266   :  { %410 = dma.vmem_to_hbm [thread:$0]  %s405_s12, 256, %s691_s4, [#allocation4], %s562_s21, %s562_s21, %s563_s22  }
 0x267   :  { %548 = dma.done.wait [#allocation4], 256  }
 0x268   :  { %549 = vsyncadd [#allocation4], 4294967040 }
 0x269   :  { %414 = vsyncpa [#allocation3], 1 }
 0x26a   :  { %415 = vsyncpa [#allocation4], 1 }

</bundles_post_ra>
